<compile_context>
chip_gen: v5e
topology: v5e:2x2
jax: 0.10.0
libtpu: 0.0.40
codegen_flags: <defaults>
</compile_context>

<pallas_src>
import functools

import jax
import jax.numpy as jnp
from jax import lax
from jax.experimental import pallas as pl
from jax.experimental.pallas import tpu as pltpu


def _pick_tile(n, target):
    """Largest tile <= target that divides n and is a multiple of 128 (or n itself).

    The tile is used as the *last* (lane) dim of the fused-conv output block,
    so it must be a multiple of 128 or equal to the full extent.
    """
    if n <= target:
        return n
    t = target
    while t >= 128:
        if n % t == 0:
            return t
        t //= 2
    return n  # fall back to untiled for awkward N


# ----------------------------------------------------------------------------
# Kernel 1: pairwise "distance"  d[i,j] = 2*xi.xj - ||xi||^2 - ||xj||^2
#           (matches PyTorch knn() exactly; f32 to keep neighbor parity)
# ----------------------------------------------------------------------------
def _pdist_kernel(xr_ref, xf_ref, sqr_ref, sqc_ref, d_ref):
    xr = xr_ref[0]                                            # (TN, C) rows of this tile
    xf = xf_ref[0]                                            # (N, C)  all points (resident)
    # Gram tile g[i, j] = xi . xj   (q @ k^T style contraction on last dims)
    g = lax.dot_general(xr, xf, (((1,), (1,)), ((), ())),
                        preferred_element_type=jnp.float32)   # (TN, N)
    d_ref[0] = (2.0 * g - sqr_ref[0] - sqc_ref[0]).astype(d_ref.dtype)


def pairwise_neg_sqdist(x_bnc, *, tile_n=256):
    B, N, C = x_bnc.shape
    tn = _pick_tile(N, tile_n)
    sq = jnp.sum(x_bnc * x_bnc, axis=-1)                      # (B, N)
    sq_col = sq[:, :, None]                                   # (B, N, 1): ||xi||^2 per row
    sq_row = sq[:, None, :]                                   # (B, 1, N): ||xj||^2 per col
    return pl.pallas_call(
        _pdist_kernel,
        out_shape=jax.ShapeDtypeStruct((B, N, N), jnp.float32),
        grid_spec=pltpu.PrefetchScalarGridSpec(
            num_scalar_prefetch=0,
            grid=(B, N // tn),
            in_specs=[
                pl.BlockSpec((1, tn, C), lambda b, i: (b, i, 0)),   # row tile
                pl.BlockSpec((1, N, C), lambda b, i: (b, 0, 0)),    # full x (resident per b)
                pl.BlockSpec((1, tn, 1), lambda b, i: (b, i, 0)),   # ||xi||^2
                pl.BlockSpec((1, 1, N), lambda b, i: (b, 0, 0)),    # ||xj||^2
            ],
            out_specs=pl.BlockSpec((1, tn, N), lambda b, i: (b, i, 0)),
        ),
        compiler_params=pltpu.CompilerParams(
            dimension_semantics=("parallel", "parallel"),
            vmem_limit_bytes=32 * 1024 * 1024),
        cost_estimate=pl.CostEstimate(
            flops=2 * B * N * N * C,
            transcendentals=0,
            bytes_accessed=4 * B * (2 * N * C + N * N)),
    )(x_bnc, x_bnc, sq_col, sq_row)


# ----------------------------------------------------------------------------
# Kernel 2: fused edge-feature + 1x1 conv (MXU, bf16 in / f32 acc) + folded BN
#           + LeakyReLU(0.2) + running max over k.  Output layout (B, Cout, N).
# ----------------------------------------------------------------------------
def _edge_conv_kernel(neigh_ref, xc_ref, w1_ref, wc_ref, shift_ref, out_ref,
                      *, k, negative_slope):
    xc = xc_ref[0]                                            # (TN, C)  center points
    w1 = w1_ref[...]                                          # (Cout, C) weight on (nbr - ctr)
    wc = wc_ref[...]                                          # (Cout, C) = W2 - W1 (on ctr)

    # Per-point contribution shared by all k neighbors:  (W2-W1) ctr + BN shift
    base = lax.dot_general(wc, xc, (((1,), (1,)), ((), ())),
                           preferred_element_type=jnp.float32)            # (Cout, TN)
    base = base + shift_ref[...]                                          # (Cout, 1) bcast

    # k is a small static int: fully-unrolled running max keeps only the
    # (Cout, TN) accumulator live (no (N, k, Cout) intermediate, no spills).
    acc = jnp.full(base.shape, -jnp.inf, dtype=jnp.float32)
    for j in range(k):
        nj = neigh_ref[0, j]                                              # (TN, C)
        y = lax.dot_general(w1, nj, (((1,), (1,)), ((), ())),
                            preferred_element_type=jnp.float32) + base    # (Cout, TN)
        y = jnp.where(y > 0, y, negative_slope * y)                       # LeakyReLU(0.2)
        acc = jnp.maximum(acc, y)

    out_ref[0] = acc.astype(out_ref.dtype)                                # (Cout, TN)


def fused_edge_conv(neigh_bknc, x_bnc_lp, w1, wc, shift_col, *, tile_n=512):
    B, K, N, C = neigh_bknc.shape
    Cout = w1.shape[0]
    tn = _pick_tile(N, tile_n)
    kern = functools.partial(_edge_conv_kernel, k=K, negative_slope=0.2)
    bytes_in = (neigh_bknc.size * neigh_bknc.dtype.itemsize
                + x_bnc_lp.size * x_bnc_lp.dtype.itemsize)
    return pl.pallas_call(
        kern,
        out_shape=jax.ShapeDtypeStruct((B, Cout, N), jnp.float32),
        grid_spec=pltpu.PrefetchScalarGridSpec(
            num_scalar_prefetch=0,
            grid=(B, N // tn),
            in_specs=[
                pl.BlockSpec((1, K, tn, C), lambda b, i: (b, 0, i, 0)),   # neighbors (bf16)
                pl.BlockSpec((1, tn, C), lambda b, i: (b, i, 0)),         # centers   (bf16)
                pl.BlockSpec((Cout, C), lambda b, i: (0, 0)),             # W1 (resident)
                pl.BlockSpec((Cout, C), lambda b, i: (0, 0)),             # W2-W1 (resident)
                pl.BlockSpec((Cout, 1), lambda b, i: (0, 0)),             # BN shift (f32)
            ],
            out_specs=pl.BlockSpec((1, Cout, tn), lambda b, i: (b, 0, i)),
        ),
        compiler_params=pltpu.CompilerParams(
            dimension_semantics=("parallel", "parallel"),
            vmem_limit_bytes=32 * 1024 * 1024),
        cost_estimate=pl.CostEstimate(
            flops=2 * B * N * (K + 1) * C * Cout,
            transcendentals=0,
            bytes_accessed=bytes_in + 4 * B * Cout * N),
    )(neigh_bknc, x_bnc_lp, w1, wc, shift_col)


# ----------------------------------------------------------------------------
# EdgeConv wrapper (glue in plain JAX: top_k, neighbor gather, BN folding)
# ----------------------------------------------------------------------------
def edge_conv_forward(x, params, k, *, mxu_dtype=jnp.bfloat16):
    """x: (B, C_in, N) float32 (PyTorch NCL convention). Returns (B, C_out, N)."""
    B, Cin, N = x.shape
    x_bnc = jnp.transpose(x, (0, 2, 1))                       # (B, N, C_in)

    # ---- kNN: topk of -||xi - xj||^2 (Pallas distances, f32 for neighbor parity)
    dist = pairwise_neg_sqdist(x_bnc)                         # (B, N, N)
    _, idx = lax.top_k(dist, k)                               # (B, N, k)
    # TODO(synk): fuse top-k into the distance kernel (streamed per-row running
    # top-k in VMEM) to avoid the (B, N, N) HBM round trip at large N.

    # ---- Gather neighbor features in (B, k, N, C) layout so the kernel can
    # slice one neighbor plane at a time; bf16 halves HBM traffic.
    # TODO(synk): move this gather into the Pallas kernel (scalar-prefetch /
    # DMA gather) to also eliminate the (B, k, N, C) HBM round trip.
    idx_kn = jnp.transpose(idx, (0, 2, 1))                    # (B, k, N)
    neigh = jax.vmap(lambda xb, ib: xb[ib])(x_bnc, idx_kn)    # (B, k, N, C)
    neigh = neigh.astype(mxu_dtype)
    x_lp = x_bnc.astype(mxu_dtype)

    # ---- Fold BN (inference, running stats) into the conv weight; split
    # W = [W1 | W2] (PyTorch channel order: cat(nbr - ctr, ctr)) so that
    # y = (nbr - ctr) W1^T + ctr W2^T = nbr W1^T + ctr (W2 - W1)^T.
    w, gamma, beta, run_mean, run_var = (params["w"], params["gamma"],
                                         params["beta"], params["mean"],
                                         params["var"])
    eps = 1e-5
    scale = gamma / jnp.sqrt(run_var + eps)                   # (Cout,)
    shift = beta - run_mean * scale                           # (Cout,)
    w_fold = w * scale[:, None]                               # (Cout, 2*Cin)
    w1 = w_fold[:, :Cin].astype(mxu_dtype)                    # (Cout, Cin)
    wc = (w_fold[:, Cin:] - w_fold[:, :Cin]).astype(mxu_dtype)
    shift_col = shift.reshape(-1, 1).astype(jnp.float32)      # (Cout, 1)

    # ---- Fused conv + BN + LeakyReLU + max-over-k, output already (B, Cout, N)
    return fused_edge_conv(neigh, x_lp, w1, wc, shift_col)


def init_params(key, in_channels, out_channels):
    k1, k2, k3, k4 = jax.random.split(key, 4)
    w = 0.1 * jax.random.normal(k1, (out_channels, 2 * in_channels), jnp.float32)
    gamma = 1.0 + 0.05 * jax.random.normal(k2, (out_channels,), jnp.float32)
    beta = 0.05 * jax.random.normal(k3, (out_channels,), jnp.float32)
    run_mean = 0.05 * jax.random.normal(k4, (out_channels,), jnp.float32)
    run_var = jnp.ones((out_channels,), jnp.float32)
    return {"w": w, "gamma": gamma, "beta": beta, "mean": run_mean, "var": run_var}


if __name__ == "__main__":
    B, Cin, N, K, Cout = 2, 4, 16, 4, 32
    key = jax.random.PRNGKey(0)
    kx, kp = jax.random.split(key)
    x = jax.random.normal(kx, (B, Cin, N), jnp.float32)       # PyTorch (B, C, N)
    params = init_params(kp, Cin, Cout)

    fwd = jax.jit(lambda xx: edge_conv_forward(xx, params, K))
    out = fwd(x)
    jax.block_until_ready(out)
    assert out.shape == (B, Cout, N), out.shape
    assert out.dtype == jnp.float32
    print("KERNEL_OK")
</pallas_src>

<mosaic_0001>
module attributes {stable_mosaic.version = 11 : i64} {
  func.func @_pdist_kernel(%arg0: i32, %arg1: i32, %arg2: memref<1x16x4xf32, #tpu.memory_space<vmem>>, %arg3: memref<1x16x4xf32, #tpu.memory_space<vmem>>, %arg4: memref<1x16x1xf32, #tpu.memory_space<vmem>>, %arg5: memref<1x1x16xf32, #tpu.memory_space<vmem>>, %arg6: memref<1x16x16xf32, #tpu.memory_space<vmem>>) attributes {dimension_semantics = [#tpu.dimension_semantics<parallel>, #tpu.dimension_semantics<parallel>], iteration_bounds = array<i64: 2, 1>, scalar_prefetch = 0 : i64, scratch_operands = 0 : i64, tpu.core_type = #tpu.core_type<tc>, window_params = [{transform_indices = @transform_0, window_bounds = array<i64: 1, 16, 4>}, {transform_indices = @transform_1, window_bounds = array<i64: 1, 16, 4>}, {transform_indices = @transform_2, window_bounds = array<i64: 1, 16, 1>}, {transform_indices = @transform_3, window_bounds = array<i64: 1, 1, 16>}, {transform_indices = @transform_4, window_bounds = array<i64: 1, 16, 16>}]} {
    %c0 = arith.constant 0 : index
    %c0_0 = arith.constant 0 : index
    %c0_1 = arith.constant 0 : index
    %0 = vector.load %arg2[%c0, %c0_0, %c0_1] : memref<1x16x4xf32, #tpu.memory_space<vmem>>, vector<1x16x4xf32>
    %1 = vector.shape_cast %0 : vector<1x16x4xf32> to vector<16x4xf32>
    %c0_2 = arith.constant 0 : index
    %c0_3 = arith.constant 0 : index
    %c0_4 = arith.constant 0 : index
    %2 = vector.load %arg3[%c0_2, %c0_3, %c0_4] : memref<1x16x4xf32, #tpu.memory_space<vmem>>, vector<1x16x4xf32>
    %3 = vector.shape_cast %2 : vector<1x16x4xf32> to vector<16x4xf32>
    %cst = arith.constant dense<0.000000e+00> : vector<16x16xf32>
    %4 = tpu.matmul %1, %3, %cst {dimension_numbers = #tpu.dot_dimension_numbers<[1], [1], [0], [0], [0, 0, 1, 0], [], []>} : vector<16x4xf32>, vector<16x4xf32>, vector<16x16xf32> -> vector<16x16xf32>
    %cst_5 = arith.constant 2.000000e+00 : f32
    %5 = vector.broadcast %cst_5 : f32 to vector<16x16xf32>
    %6 = arith.mulf %5, %4 : vector<16x16xf32>
    %c0_6 = arith.constant 0 : index
    %c0_7 = arith.constant 0 : index
    %c0_8 = arith.constant 0 : index
    %7 = vector.load %arg4[%c0_6, %c0_7, %c0_8] : memref<1x16x1xf32, #tpu.memory_space<vmem>>, vector<1x16x1xf32>
    %8 = vector.shape_cast %7 : vector<1x16x1xf32> to vector<16x1xf32>
    %9 = vector.broadcast %8 : vector<16x1xf32> to vector<16x16xf32>
    %10 = arith.subf %6, %9 : vector<16x16xf32>
    %c0_9 = arith.constant 0 : index
    %c0_10 = arith.constant 0 : index
    %c0_11 = arith.constant 0 : index
    %11 = vector.load %arg5[%c0_9, %c0_10, %c0_11] : memref<1x1x16xf32, #tpu.memory_space<vmem>>, vector<1x1x16xf32>
    %12 = vector.shape_cast %11 : vector<1x1x16xf32> to vector<1x16xf32>
    %13 = vector.broadcast %12 : vector<1x16xf32> to vector<16x16xf32>
    %14 = arith.subf %10, %13 : vector<16x16xf32>
    %c0_12 = arith.constant 0 : index
    %c0_13 = arith.constant 0 : index
    %c0_14 = arith.constant 0 : index
    %15 = vector.load %arg6[%c0_12, %c0_13, %c0_14] : memref<1x16x16xf32, #tpu.memory_space<vmem>>, vector<1x16x16xf32>
    %16 = vector.shape_cast %15 : vector<1x16x16xf32> to vector<16x16xf32>
    %17 = vector.shape_cast %14 : vector<16x16xf32> to vector<1x16x16xf32>
    tpu.vector_store %arg6[%c0_12, %c0_13, %c0_14], %17 {strides = array<i32>} : memref<1x16x16xf32, #tpu.memory_space<vmem>>, vector<1x16x16xf32>,
    return
  }
  func.func @transform_0(%arg0: i32, %arg1: i32) -> (i32, i32, i32) {
    %c0_i32 = arith.constant 0 : i32
    %c0_i32_0 = arith.constant 0 : i32
    return %arg0, %arg1, %c0_i32 : i32, i32, i32
  }
  func.func @transform_1(%arg0: i32, %arg1: i32) -> (i32, i32, i32) {
    %c0_i32 = arith.constant 0 : i32
    %c0_i32_0 = arith.constant 0 : i32
    %c0_i32_1 = arith.constant 0 : i32
    return %arg0, %c0_i32, %c0_i32_0 : i32, i32, i32
  }
  func.func @transform_2(%arg0: i32, %arg1: i32) -> (i32, i32, i32) {
    %c0_i32 = arith.constant 0 : i32
    %c0_i32_0 = arith.constant 0 : i32
    return %arg0, %arg1, %c0_i32 : i32, i32, i32
  }
  func.func @transform_3(%arg0: i32, %arg1: i32) -> (i32, i32, i32) {
    %c0_i32 = arith.constant 0 : i32
    %c0_i32_0 = arith.constant 0 : i32
    %c0_i32_1 = arith.constant 0 : i32
    return %arg0, %c0_i32, %c0_i32_0 : i32, i32, i32
  }
  func.func @transform_4(%arg0: i32, %arg1: i32) -> (i32, i32, i32) {
    %c0_i32 = arith.constant 0 : i32
    %c0_i32_0 = arith.constant 0 : i32
    return %arg0, %arg1, %c0_i32 : i32, i32, i32
  }
}

module attributes {stable_mosaic.version = 11 : i64} {
  func.func @_edge_conv_kernel(%arg0: i32, %arg1: i32, %arg2: memref<1x4x16x4xbf16, #tpu.memory_space<vmem>>, %arg3: memref<1x16x4xbf16, #tpu.memory_space<vmem>>, %arg4: memref<32x4xbf16, #tpu.memory_space<vmem>>, %arg5: memref<32x4xbf16, #tpu.memory_space<vmem>>, %arg6: memref<32x1xf32, #tpu.memory_space<vmem>>, %arg7: memref<1x32x16xf32, #tpu.memory_space<vmem>>) attributes {dimension_semantics = [#tpu.dimension_semantics<parallel>, #tpu.dimension_semantics<parallel>], iteration_bounds = array<i64: 2, 1>, scalar_prefetch = 0 : i64, scratch_operands = 0 : i64, tpu.core_type = #tpu.core_type<tc>, window_params = [{transform_indices = @transform_0, window_bounds = array<i64: 1, 4, 16, 4>}, {transform_indices = @transform_1, window_bounds = array<i64: 1, 16, 4>}, {pipeline_mode = #tpu.pipeline_mode<synchronous>, transform_indices = @transform_2, window_bounds = array<i64: 32, 4>}, {pipeline_mode = #tpu.pipeline_mode<synchronous>, transform_indices = @transform_3, window_bounds = array<i64: 32, 4>}, {pipeline_mode = #tpu.pipeline_mode<synchronous>, transform_indices = @transform_4, window_bounds = array<i64: 32, 1>}, {transform_indices = @transform_5, window_bounds = array<i64: 1, 32, 16>}]} {
    %c0 = arith.constant 0 : index
    %c0_0 = arith.constant 0 : index
    %c0_1 = arith.constant 0 : index
    %0 = vector.load %arg3[%c0, %c0_0, %c0_1] : memref<1x16x4xbf16, #tpu.memory_space<vmem>>, vector<1x16x4xbf16>
    %1 = vector.shape_cast %0 : vector<1x16x4xbf16> to vector<16x4xbf16>
    %c0_2 = arith.constant 0 : index
    %c0_3 = arith.constant 0 : index
    %2 = vector.load %arg4[%c0_2, %c0_3] : memref<32x4xbf16, #tpu.memory_space<vmem>>, vector<32x4xbf16>
    %c0_4 = arith.constant 0 : index
    %c0_5 = arith.constant 0 : index
    %3 = vector.load %arg5[%c0_4, %c0_5] : memref<32x4xbf16, #tpu.memory_space<vmem>>, vector<32x4xbf16>
    %cst = arith.constant dense<0.000000e+00> : vector<32x16xf32>
    %4 = tpu.matmul %3, %1, %cst {dimension_numbers = #tpu.dot_dimension_numbers<[1], [1], [0], [0], [0, 0, 1, 0], [], []>} : vector<32x4xbf16>, vector<16x4xbf16>, vector<32x16xf32> -> vector<32x16xf32>
    %c0_6 = arith.constant 0 : index
    %c0_7 = arith.constant 0 : index
    %5 = vector.load %arg6[%c0_6, %c0_7] : memref<32x1xf32, #tpu.memory_space<vmem>>, vector<32x1xf32>
    %6 = vector.broadcast %5 : vector<32x1xf32> to vector<32x16xf32>
    %7 = arith.addf %4, %6 : vector<32x16xf32>
    %cst_8 = arith.constant 0xFF800000 : f32
    %8 = vector.broadcast %cst_8 : f32 to vector<32x16xf32>
    %c0_9 = arith.constant 0 : index
    %c0_10 = arith.constant 0 : index
    %c0_11 = arith.constant 0 : index
    %c0_12 = arith.constant 0 : index
    %9 = vector.load %arg2[%c0_9, %c0_10, %c0_11, %c0_12] : memref<1x4x16x4xbf16, #tpu.memory_space<vmem>>, vector<1x1x16x4xbf16>
    %10 = vector.shape_cast %9 : vector<1x1x16x4xbf16> to vector<16x4xbf16>
    %cst_13 = arith.constant dense<0.000000e+00> : vector<32x16xf32>
    %11 = tpu.matmul %2, %10, %cst_13 {dimension_numbers = #tpu.dot_dimension_numbers<[1], [1], [0], [0], [0, 0, 1, 0], [], []>} : vector<32x4xbf16>, vector<16x4xbf16>, vector<32x16xf32> -> vector<32x16xf32>
    %12 = arith.addf %11, %7 : vector<32x16xf32>
    %cst_14 = arith.constant 0.000000e+00 : f32
    %13 = vector.broadcast %cst_14 : f32 to vector<32x16xf32>
    %14 = arith.cmpf ogt, %12, %13 : vector<32x16xf32>
    %cst_15 = arith.constant 2.000000e-01 : f32
    %15 = vector.broadcast %cst_15 : f32 to vector<32x16xf32>
    %16 = arith.mulf %15, %12 : vector<32x16xf32>
    %17 = arith.select %14, %12, %16 : vector<32x16xi1>, vector<32x16xf32>
    %18 = arith.maximumf %8, %17 : vector<32x16xf32>
    %c0_16 = arith.constant 0 : index
    %c1 = arith.constant 1 : index
    %c0_17 = arith.constant 0 : index
    %c0_18 = arith.constant 0 : index
    %19 = vector.load %arg2[%c0_16, %c1, %c0_17, %c0_18] : memref<1x4x16x4xbf16, #tpu.memory_space<vmem>>, vector<1x1x16x4xbf16>
    %20 = vector.shape_cast %19 : vector<1x1x16x4xbf16> to vector<16x4xbf16>
    %cst_19 = arith.constant dense<0.000000e+00> : vector<32x16xf32>
    %21 = tpu.matmul %2, %20, %cst_19 {dimension_numbers = #tpu.dot_dimension_numbers<[1], [1], [0], [0], [0, 0, 1, 0], [], []>} : vector<32x4xbf16>, vector<16x4xbf16>, vector<32x16xf32> -> vector<32x16xf32>
    %22 = arith.addf %21, %7 : vector<32x16xf32>
    %cst_20 = arith.constant 0.000000e+00 : f32
    %23 = vector.broadcast %cst_20 : f32 to vector<32x16xf32>
    %24 = arith.cmpf ogt, %22, %23 : vector<32x16xf32>
    %cst_21 = arith.constant 2.000000e-01 : f32
    %25 = vector.broadcast %cst_21 : f32 to vector<32x16xf32>
    %26 = arith.mulf %25, %22 : vector<32x16xf32>
    %27 = arith.select %24, %22, %26 : vector<32x16xi1>, vector<32x16xf32>
    %28 = arith.maximumf %18, %27 : vector<32x16xf32>
    %c0_22 = arith.constant 0 : index
    %c2 = arith.constant 2 : index
    %c0_23 = arith.constant 0 : index
    %c0_24 = arith.constant 0 : index
    %29 = vector.load %arg2[%c0_22, %c2, %c0_23, %c0_24] : memref<1x4x16x4xbf16, #tpu.memory_space<vmem>>, vector<1x1x16x4xbf16>
    %30 = vector.shape_cast %29 : vector<1x1x16x4xbf16> to vector<16x4xbf16>
    %cst_25 = arith.constant dense<0.000000e+00> : vector<32x16xf32>
    %31 = tpu.matmul %2, %30, %cst_25 {dimension_numbers = #tpu.dot_dimension_numbers<[1], [1], [0], [0], [0, 0, 1, 0], [], []>} : vector<32x4xbf16>, vector<16x4xbf16>, vector<32x16xf32> -> vector<32x16xf32>
    %32 = arith.addf %31, %7 : vector<32x16xf32>
    %cst_26 = arith.constant 0.000000e+00 : f32
    %33 = vector.broadcast %cst_26 : f32 to vector<32x16xf32>
    %34 = arith.cmpf ogt, %32, %33 : vector<32x16xf32>
    %cst_27 = arith.constant 2.000000e-01 : f32
    %35 = vector.broadcast %cst_27 : f32 to vector<32x16xf32>
    %36 = arith.mulf %35, %32 : vector<32x16xf32>
    %37 = arith.select %34, %32, %36 : vector<32x16xi1>, vector<32x16xf32>
    %38 = arith.maximumf %28, %37 : vector<32x16xf32>
    %c0_28 = arith.constant 0 : index
    %c3 = arith.constant 3 : index
    %c0_29 = arith.constant 0 : index
    %c0_30 = arith.constant 0 : index
    %39 = vector.load %arg2[%c0_28, %c3, %c0_29, %c0_30] : memref<1x4x16x4xbf16, #tpu.memory_space<vmem>>, vector<1x1x16x4xbf16>
    %40 = vector.shape_cast %39 : vector<1x1x16x4xbf16> to vector<16x4xbf16>
    %cst_31 = arith.constant dense<0.000000e+00> : vector<32x16xf32>
    %41 = tpu.matmul %2, %40, %cst_31 {dimension_numbers = #tpu.dot_dimension_numbers<[1], [1], [0], [0], [0, 0, 1, 0], [], []>} : vector<32x4xbf16>, vector<16x4xbf16>, vector<32x16xf32> -> vector<32x16xf32>
    %42 = arith.addf %41, %7 : vector<32x16xf32>
    %cst_32 = arith.constant 0.000000e+00 : f32
    %43 = vector.broadcast %cst_32 : f32 to vector<32x16xf32>
    %44 = arith.cmpf ogt, %42, %43 : vector<32x16xf32>
    %cst_33 = arith.constant 2.000000e-01 : f32
    %45 = vector.broadcast %cst_33 : f32 to vector<32x16xf32>
    %46 = arith.mulf %45, %42 : vector<32x16xf32>
    %47 = arith.select %44, %42, %46 : vector<32x16xi1>, vector<32x16xf32>
    %48 = arith.maximumf %38, %47 : vector<32x16xf32>
    %c0_34 = arith.constant 0 : index
    %c0_35 = arith.constant 0 : index
    %c0_36 = arith.constant 0 : index
    %49 = vector.load %arg7[%c0_34, %c0_35, %c0_36] : memref<1x32x16xf32, #tpu.memory_space<vmem>>, vector<1x32x16xf32>
    %50 = vector.shape_cast %49 : vector<1x32x16xf32> to vector<32x16xf32>
    %51 = vector.shape_cast %48 : vector<32x16xf32> to vector<1x32x16xf32>
    tpu.vector_store %arg7[%c0_34, %c0_35, %c0_36], %51 {strides = array<i32>} : memref<1x32x16xf32, #tpu.memory_space<vmem>>, vector<1x32x16xf32>,
    return
  }
  func.func @transform_0(%arg0: i32, %arg1: i32) -> (i32, i32, i32, i32) {
    %c0_i32 = arith.constant 0 : i32
    %c0_i32_0 = arith.constant 0 : i32
    %c0_i32_1 = arith.constant 0 : i32
    return %arg0, %c0_i32, %arg1, %c0_i32_0 : i32, i32, i32, i32
  }
  func.func @transform_1(%arg0: i32, %arg1: i32) -> (i32, i32, i32) {
    %c0_i32 = arith.constant 0 : i32
    %c0_i32_0 = arith.constant 0 : i32
    return %arg0, %arg1, %c0_i32 : i32, i32, i32
  }
  func.func @transform_2(%arg0: i32, %arg1: i32) -> (i32, i32) {
    %c0_i32 = arith.constant 0 : i32
    %c0_i32_0 = arith.constant 0 : i32
    %c0_i32_1 = arith.constant 0 : i32
    return %c0_i32, %c0_i32_0 : i32, i32
  }
  func.func @transform_3(%arg0: i32, %arg1: i32) -> (i32, i32) {
    %c0_i32 = arith.constant 0 : i32
    %c0_i32_0 = arith.constant 0 : i32
    %c0_i32_1 = arith.constant 0 : i32
    return %c0_i32, %c0_i32_0 : i32, i32
  }
  func.func @transform_4(%arg0: i32, %arg1: i32) -> (i32, i32) {
    %c0_i32 = arith.constant 0 : i32
    %c0_i32_0 = arith.constant 0 : i32
    %c0_i32_1 = arith.constant 0 : i32
    return %c0_i32, %c0_i32_0 : i32, i32
  }
  func.func @transform_5(%arg0: i32, %arg1: i32) -> (i32, i32, i32) {
    %c0_i32 = arith.constant 0 : i32
    %c0_i32_0 = arith.constant 0 : i32
    return %arg0, %c0_i32, %arg1 : i32, i32, i32
  }
}

</mosaic_0001>

<bundles_post_ra>
// kernel: _lambda_.2
= control target key start
LH: loop header
LB: loop body
LE: loop exit
PB: predicated region body
PF: predicated region fallthrough
CT: control target
= control target key end

     0   :  { %s600_s15 = smov 0   ;;  %s602_s16 = smov 0   ;;  %s654_s0 = inlined_call_operand.vmem [shape: f32[2,16,4], index: 0, kind: input, shape index: {}, may-alias: {0,1}]   ;;  %s655_s1 = inlined_call_operand.vmem [shape: f32[2,16,4], index: 1, kind: input, shape index: {}, may-alias: {0,1}]   ;;  %s656_s2 = inlined_call_operand.vmem [shape: f32[2,16,1], index: 2, kind: input, shape index: {}]   ;;  %s657_s3 = inlined_call_operand.vmem [shape: f32[2,1,16], index: 3, kind: input, shape index: {}]   ;;  %s658_s4 = inlined_call_operand.vmem [shape: f32[2,16,16], index: 4, kind: output, shape index: {}]  }
   0x1   :  { %s604_s17 = smov 0  }
   0x2 LB: > { %s26_s18 = sadd.s32 1, %s568_s16  ;;  %p502_p0 = scmp.ge.s32.totalorder %s572_s17, 1  ;;  %s572_s17 = sphi %s604_s17, %s14_s17   ;;  %s568_s16 = sphi %s602_s16, %s660_s16   ;;  %s564_s15 = sphi %s600_s15, %s659_s15  }
   0x3   : > { %p28_p1 = scmp.ge.s32.totalorder %s26_s18, 2  ;;  %p218_p2 = scmp.lt.s32.totalorder %s572_s17, 3 }
   0x5   : > { %s662_s18 = smov (%p28_p1, %s26_s18), 0  ;;  %p219_p3 = pnand %p502_p0, %p218_p2 }
   0x6   : > { %p270_p4 = scmp.lt.s32.totalorder (!%p219_p3), %s564_s15, 1 }
   0x7   : > { %222 = sbr.rel (%p219_p3) target bundleno = 157 (0x9d), region = 36 }
   0xc   : > { %v574_v0 = vmov 0   ;;  %s664_s15 = smov (!%p270_p4, %s564_s15), 1  ;;  %vm311_vm0 = vcmask 31744   ;;  %vm369_vm1 = vcmask 130048  }
   0xd   : > { %548 = vset.pattern.permute.xlu0 %v574_v0  ;;  %s618_s19 = sshll.u32 %s664_s15, 4  ;;  %s296_s22 = scalar_lea.vmem %s657_s3, %s664_s15 }
   0xe   : > { %s283_s25 = scalar_lea.vmem %s655_s1, %s618_s19  ;;  %s292_s28 = scalar_lea.vmem %s656_s2, %s618_s19  ;;  %v549_v11 = vld [vmem:[%s296_s22] ss:$0 sm:$0xff] }
   0xf   : > { %v310_v1 = vld [vmem:[%s283_s25 + $0x8] sm:$0xff]  ;;  %v349_v2 = vld [vmem:[%s292_s28] sm:$0xff]  ;;  %s277_s5 = scalar_lea.vmem %s654_s0, %s618_s19  ;;  %s305_s8 = scalar_lea.vmem %s658_s4, %s618_s19 }
  0x10   : > { %511 = vmatpush.xpose.msk.msra.mxu0 %vm311_vm0, %v310_v1  ;;  %521 = vmatpush.xpose.msk.msra.mxu1 %vm311_vm0, %v310_v1  ;;  %v309_v3 = vld [vmem:[%s283_s25] sm:$0xff]  ;;  %v308_v5 = vld [vmem:[%s277_s5 + $0x8] sm:$0xff] }
  0x11   : > { %353 = vperm.xlu0 %548, %v349_v2   ;;  %v307_v4 = vld [vmem:[%s277_s5] sm:$0xff]  ;;  %v350_v6 = vld [vmem:[%s292_s28 + $0x8] sm:$0xff] }
  0x14   : > { %512 = vmatpush.xpose.msk.msra.mxu0 %vm311_vm0, %v309_v3  ;;  %522 = vmatpush.xpose.msk.msra.mxu1 %vm311_vm0, %v309_v3 }
  0x17   : > { %513 = vmatmul.msk.f32.vlgmr.msra.gmra.mxu0 %vm311_vm0, %v307_v4  ;;  %514 = vmatmul.msk.f32.vlgmr.msra.gmra.mxu1 %vm311_vm0, %v308_v5 }
  0x19   : > { %358 = vperm.xlu0 %548, %v350_v6  }
  0x83   : > { %v354_v7 = vpop.permute.xlu0 %353 }
  0x8b   : > { %v359_v13 = vpop.permute.xlu0 %358 }
  0x94   : > { %v341_v8 = vpop.f32.mrf.mxu0  ;;  %v344_v9 = vpop.f32.mrf.mxu1 }
  0x95   : > { %v347_v10 = vmul.f32 2.0, %v341_v8  ;;  %v348_v12 = vmul.f32 2.0, %v344_v9 }
  0x97   : > { %v361_v14 = vsub.f32 %v347_v10, %v354_v7  ;;  %v362_v15 = vsub.f32 %v348_v12, %v359_v13 }
  0x99   : > { %v367_v16 = vsub.f32 %v361_v14, %v549_v11  ;;  %v368_v17 = vsub.f32 %v362_v15, %v549_v11 }
  0x9b   : > { %370 = vst.msk [vmem:[%s305_s8] sm:$0xff] %vm369_vm1, %v367_v16 }
  0x9c   : > { %371 = vst.msk [vmem:[%s305_s8 + $0x8] sm:$0xff] %vm369_vm1, %v368_v17 }
  0x9d PF: > { %s14_s17 = sadd.s32 1, %s572_s17   ;;  %s659_s15 = smov %s568_s16 }
  0x9e   : > { %p11_p5 = scmp.ge.s32.totalorder %s14_s17, 4   ;;  %s660_s16 = smov %s662_s18 }
  0xa0   :  { %13 = sbr.rel (!%p11_p5) target bundleno = 2 (0x2), region = 75 }

// kernel: _lambda_.3
= control target key start
LH: loop header
LB: loop body
LE: loop exit
PB: predicated region body
PF: predicated region fallthrough
CT: control target
= control target key end

     0   :  { %s837_s18 = smov 0   ;;  %s839_s19 = smov 0   ;;  %s933_s0 = inlined_call_operand.vmem [shape: bf16[2,4,16,4], index: 0, kind: input, shape index: {}]   ;;  %s934_s1 = inlined_call_operand.vmem [shape: bf16[2,16,4], index: 1, kind: input, shape index: {}]   ;;  %s935_s2 = inlined_call_operand.vmem [shape: bf16[32,4], index: 2, kind: input, shape index: {}]   ;;  %s936_s3 = inlined_call_operand.vmem [shape: bf16[32,4], index: 3, kind: input, shape index: {}]   ;;  %s937_s4 = inlined_call_operand.vmem [shape: f32[32,1], index: 4, kind: input, shape index: {}]   ;;  %s938_s5 = inlined_call_operand.vmem [shape: f32[2,32,16], index: 5, kind: output, shape index: {}]  }
   0x1   :  { %s841_s20 = smov 0  }
   0x2 LB: > { %s27_s21 = sadd.s32 1, %s800_s19  ;;  %p681_p0 = scmp.ge.s32.totalorder %s804_s20, 1  ;;  %s804_s20 = sphi %s841_s20, %s15_s20   ;;  %s800_s19 = sphi %s839_s19, %s940_s19   ;;  %s796_s18 = sphi %s837_s18, %s939_s18  }
   0x3   : > { %p29_p1 = scmp.ge.s32.totalorder %s27_s21, 2  ;;  %p225_p2 = scmp.lt.s32.totalorder %s804_s20, 3 }
   0x5   : > { %s942_s21 = smov (%p29_p1, %s27_s21), 0  ;;  %p226_p3 = pnand %p681_p0, %p225_p2 }
   0x6   : > { %p270_p4 = scmp.lt.s32.totalorder (!%p226_p3), %s796_s18, 1 }
   0x7   : > { %229 = sbr.rel (%p226_p3) target bundleno = 203 (0xcb), region = 40 }
   0xc   : > { %v806_v0 = vmov 0   ;;  %v310_v1 = vld [vmem:[%s937_s4 + $0x10] sm:$0xff]  ;;  %v308_v2 = vld [vmem:[%s937_s4] sm:$0xff]  ;;  %s944_s18 = smov (!%p270_p4, %s796_s18), 1  ;;  %vm347_vm0 = vcmask 31744   ;;  %v311_v13 = vld [vmem:[%s937_s4 + $0x18] sm:$0xff] }
   0xd   : > { %781 = vset.pattern.permute.xlu1 %v806_v0  ;;  %780 = vset.pattern.permute.xlu0 %v806_v0  ;;  %s742_s26 = sshll.u32 %s944_s18, 5  ;;  %s743_s27 = sshll.u32 %s944_s18, 3  ;;  %v309_v14 = vld [vmem:[%s937_s4 + $0x8] sm:$0xff]  ;;  %v748_v15 = vld [vmem:[%s936_s3] sm:$0xff]  ;;  %vm571_vm5 = vcmask 130048  }
   0xe   : > { %324 = vperm.xlu1 %781, %v310_v1   ;;  %314 = vperm.xlu0 %780, %v308_v2   ;;  %s277_s30 = scalar_lea.vmem %s933_s0, %s742_s26  ;;  %s287_s8 = scalar_lea.vmem %s934_s1, %s743_s27  ;;  %v749_v16 = vld [vmem:[%s936_s3 + $0x8] sm:$0xff]  ;;  %v746_v17 = vld [vmem:[%s935_s2] sm:$0xff] }
   0xf   : > { %v745_v3 = vld [vmem:[%s287_s8] sm:$0xff]  ;;  %v751_v4 = vld [vmem:[%s277_s30 + $0x8] sm:$0xff]  ;;  %v752_v5 = vld [vmem:[%s277_s30 + $0x10] sm:$0xff]  ;;  %s913_s28 = scalar_lea.vmem %s938_s5, %s742_s26 }
  0x10   : > { %v750_v6 = vld [vmem:[%s277_s30] sm:$0xff]  ;;  %v753_v7 = vld [vmem:[%s277_s30 + $0x18] sm:$0xff]  ;;  %v355_v8 = vsel %vm347_vm0, %v745_v3, 0  ;;  %v442_v9 = vsel %vm347_vm0, %v751_v4, 0  ;;  %v488_v10 = vsel %vm347_vm0, %v752_v5, 0  ;;  %v747_v18 = vld [vmem:[%s935_s2 + $0x8] sm:$0xff] }
  0x11   : > { %364 = vmatpush.bf16.xpose.msra.mxu0 %v355_v8  ;;  %754 = vmatpush.bf16.xpose.msra.mxu1 %v355_v8  ;;  %v400_v11 = vsel %vm347_vm0, %v750_v6, 0  ;;  %v534_v12 = vsel %vm347_vm0, %v753_v7, 0 }
  0x12   : > { %451 = vmatpush.bf16.xpose.msra.mxu2 %v442_v9  ;;  %497 = vmatpush.bf16.xpose.msra.mxu3 %v488_v10 }
  0x16   : > { %329 = vperm.xlu1 %781, %v311_v13   ;;  %319 = vperm.xlu0 %780, %v309_v14  }
  0x18   : > { %700 = vmatmul.msk.bf16.vlgmr.msra.gmra.mxu0 %vm347_vm0, %v748_v15  ;;  %701 = vmatmul.msk.bf16.vlgmr.msra.gmra.mxu1 %vm347_vm0, %v749_v16 }
  0x19   : > { %409 = vmatpush.bf16.xpose.msrb.mxu1 %v400_v11  ;;  %543 = vmatpush.bf16.xpose.msrb.mxu0 %v534_v12 }
  0x1a   : > { %722 = vmatmul.msk.bf16.vlgmr.msra.gmra.mxu2 %vm347_vm0, %v746_v17  ;;  %730 = vmatmul.msk.bf16.vlgmr.msra.gmra.mxu3 %vm347_vm0, %v746_v17 }
  0x28   : > { %714 = vmatmul.msk.bf16.vlgmr.msrb.gmra.mxu1 %vm347_vm0, %v746_v17  ;;  %738 = vmatmul.msk.bf16.vlgmr.msrb.gmra.mxu0 %vm347_vm0, %v746_v17 }
  0x2a   : > { %723 = vmatmul.msk.bf16.gmra.mxu2 %vm347_vm0, %v747_v18  ;;  %731 = vmatmul.msk.bf16.gmra.mxu3 %vm347_vm0, %v747_v18 }
  0x38   : > { %715 = vmatmul.msk.bf16.gmra.mxu1 %vm347_vm0, %v747_v18  ;;  %739 = vmatmul.msk.bf16.gmra.mxu0 %vm347_vm0, %v747_v18 }
  0x80   : > { %v315_v21 = vpop.permute.xlu0 %314  ;;  %v325_v40 = vpop.permute.xlu1 %324 }
  0x88   : > { %v320_v28 = vpop.permute.xlu0 %319  ;;  %v330_v2 = vpop.permute.xlu1 %329 }
  0x95   : > { %v366_v19 = vpop.f32.mrf.mxu0  ;;  %v371_v20 = vpop.f32.mrf.mxu1 }
  0x96   : > { %v367_v26 = vadd.f32 %v366_v19, %v315_v21  ;;  %v372_v58 = vadd.f32 %v371_v20, %v325_v40 }
  0x9d   : > { %v453_v22 = vpop.f32.mrf.mxu2  ;;  %v499_v23 = vpop.f32.mrf.mxu3 }
  0x9e   : > { %v368_v24 = vpop.f32.mrf.mxu0  ;;  %v906_v25 = vpop.f32.mrf.mxu1  ;;  %v454_v27 = vadd.f32 %v453_v22, %v367_v26  ;;  %v500_v29 = vadd.f32 %v499_v23, %v367_v26 }
  0x9f   : > { %v369_v38 = vadd.f32 %v368_v24, %v320_v28  ;;  %v374_v14 = vadd.f32 %v906_v25, %v330_v2 }
  0xa0   : > { %v467_v34 = vmul.f32 0.2, %v454_v27  ;;  %vm463_vm1 = vcmp.gt.f32.partialorder %v454_v27, 0.0  ;;  %v513_v37 = vmul.f32 0.2, %v500_v29  ;;  %vm509_vm3 = vcmp.gt.f32.partialorder %v500_v29, 0.0 }
  0xa2   : > { %v471_v41 = vsel %vm463_vm1, %v454_v27, %v467_v34  ;;  %v517_v46 = vsel %vm509_vm3, %v500_v29, %v513_v37 }
  0xa5   : > { %v455_v30 = vpop.f32.mrf.mxu2  ;;  %v501_v31 = vpop.f32.mrf.mxu3 }
  0xa6   : > { %v411_v32 = vpop.f32.mrf.mxu1  ;;  %v545_v33 = vpop.f32.mrf.mxu0  ;;  %v456_v42 = vadd.f32 %v455_v30, %v369_v38  ;;  %v502_v47 = vadd.f32 %v501_v31, %v369_v38 }
  0xa7   : > { %v412_v35 = vadd.f32 %v411_v32, %v367_v26  ;;  %v546_v36 = vadd.f32 %v545_v33, %v367_v26 }
  0xa8   : > { %v468_v52 = vmul.f32 0.2, %v456_v42  ;;  %vm464_vm6 = vcmp.gt.f32.partialorder %v456_v42, 0.0  ;;  %v514_v59 = vmul.f32 0.2, %v502_v47  ;;  %vm510_vm8 = vcmp.gt.f32.partialorder %v502_v47, 0.0 }
  0xa9   : > { %vm421_vm2 = vcmp.gt.f32.partialorder %v412_v35, 0.0  ;;  %v425_v39 = vmul.f32 0.2, %v412_v35  ;;  %v559_v44 = vmul.f32 0.2, %v546_v36  ;;  %vm555_vm4 = vcmp.gt.f32.partialorder %v546_v36, 0.0 }
  0xaa   : > { %v472_v61 = vsel %vm464_vm6, %v456_v42, %v468_v52  ;;  %v518_v3 = vsel %vm510_vm8, %v502_v47, %v514_v59 }
  0xab   : > { %v429_v43 = vsel %vm421_vm2, %v412_v35, %v425_v39  ;;  %v563_v53 = vsel %vm555_vm4, %v546_v36, %v559_v44 }
  0xac   : > { %v475_v45 = vmax.f32 %v429_v43, %v471_v41 }
  0xad   : > { %v458_v48 = vpop.f32.mrf.mxu2  ;;  %v504_v57 = vpop.f32.mrf.mxu3 }
  0xae   : > { %v521_v49 = vmax.f32 %v475_v45, %v517_v46  ;;  %v413_v50 = vpop.f32.mrf.mxu1  ;;  %v547_v51 = vpop.f32.mrf.mxu0  ;;  %v459_v62 = vadd.f32 %v458_v48, %v372_v58  ;;  %v505_v4 = vadd.f32 %v504_v57, %v372_v58 }
  0xaf   : > { %v414_v54 = vadd.f32 %v413_v50, %v369_v38  ;;  %v548_v55 = vadd.f32 %v547_v51, %v369_v38 }
  0xb0   : > { %v567_v56 = vmax.f32 %v521_v49, %v563_v53  ;;  %v469_v8 = vmul.f32 0.2, %v459_v62  ;;  %vm465_vm10 = vcmp.gt.f32.partialorder %v459_v62, 0.0  ;;  %v515_v15 = vmul.f32 0.2, %v505_v4 }
  0xb1   : > { %vm422_vm7 = vcmp.gt.f32.partialorder %v414_v54, 0.0  ;;  %v426_v60 = vmul.f32 0.2, %v414_v54  ;;  %v560_v0 = vmul.f32 0.2, %v548_v55  ;;  %vm556_vm9 = vcmp.gt.f32.partialorder %v548_v55, 0.0 }
  0xb2   : > { %572 = vst.msk [vmem:[%s913_s28] sm:$0xff] %vm571_vm5, %v567_v56  ;;  %vm511_vm12 = vcmp.gt.f32.partialorder %v505_v4, 0.0  ;;  %v473_v18 = vsel %vm465_vm10, %v459_v62, %v469_v8 }
  0xb3   : > { %v430_v63 = vsel %vm422_vm7, %v414_v54, %v426_v60  ;;  %v564_v9 = vsel %vm556_vm9, %v548_v55, %v560_v0  ;;  %v519_v23 = vsel %vm511_vm12, %v505_v4, %v515_v15 }
  0xb4   : > { %v476_v1 = vmax.f32 %v430_v63, %v472_v61 }
  0xb5   : > { %v460_v13 = vpop.f32.mrf.mxu2  ;;  %v506_v17 = vpop.f32.mrf.mxu3 }
  0xb6   : > { %v522_v5 = vmax.f32 %v476_v1, %v518_v3  ;;  %v416_v6 = vpop.f32.mrf.mxu1  ;;  %v550_v7 = vpop.f32.mrf.mxu0  ;;  %v461_v19 = vadd.f32 %v460_v13, %v374_v14  ;;  %v507_v24 = vadd.f32 %v506_v17, %v374_v14 }
  0xb7   : > { %v417_v10 = vadd.f32 %v416_v6, %v372_v58  ;;  %v551_v11 = vadd.f32 %v550_v7, %v372_v58 }
  0xb8   : > { %v568_v12 = vmax.f32 %v522_v5, %v564_v9  ;;  %v470_v25 = vmul.f32 0.2, %v461_v19  ;;  %vm466_vm14 = vcmp.gt.f32.partialorder %v461_v19, 0.0  ;;  %v516_v33 = vmul.f32 0.2, %v507_v24 }
  0xb9   : > { %vm423_vm11 = vcmp.gt.f32.partialorder %v417_v10, 0.0  ;;  %v427_v16 = vmul.f32 0.2, %v417_v10  ;;  %v561_v21 = vmul.f32 0.2, %v551_v11  ;;  %vm557_vm13 = vcmp.gt.f32.partialorder %v551_v11, 0.0 }
  0xba   : > { %573 = vst.msk [vmem:[%s913_s28 + $0x8] sm:$0xff] %vm571_vm5, %v568_v12  ;;  %vm512_vm0 = vcmp.gt.f32.partialorder %v507_v24, 0.0  ;;  %v474_v35 = vsel %vm466_vm14, %v461_v19, %v470_v25 }
  0xbb   : > { %v431_v20 = vsel %vm423_vm11, %v417_v10, %v427_v16  ;;  %v565_v29 = vsel %vm557_vm13, %v551_v11, %v561_v21  ;;  %v520_v39 = vsel %vm512_vm0, %v507_v24, %v516_v33 }
  0xbc   : > { %v477_v22 = vmax.f32 %v431_v20, %v473_v18 }
  0xbe   : > { %v523_v26 = vmax.f32 %v477_v22, %v519_v23  ;;  %v418_v27 = vpop.f32.mrf.mxu1  ;;  %v552_v28 = vpop.f32.mrf.mxu0 }
  0xbf   : > { %v419_v30 = vadd.f32 %v418_v27, %v374_v14  ;;  %v553_v31 = vadd.f32 %v552_v28, %v374_v14 }
  0xc0   : > { %v569_v32 = vmax.f32 %v523_v26, %v565_v29 }
  0xc1   : > { %vm424_vm15 = vcmp.gt.f32.partialorder %v419_v30, 0.0  ;;  %v428_v34 = vmul.f32 0.2, %v419_v30  ;;  %v562_v37 = vmul.f32 0.2, %v553_v31  ;;  %vm558_vm1 = vcmp.gt.f32.partialorder %v553_v31, 0.0 }
  0xc2   : > { %574 = vst.msk [vmem:[%s913_s28 + $0x10] sm:$0xff] %vm571_vm5, %v569_v32 }
  0xc3   : > { %v432_v36 = vsel %vm424_vm15, %v419_v30, %v428_v34  ;;  %v566_v41 = vsel %vm558_vm1, %v553_v31, %v562_v37 }
  0xc4   : > { %v478_v38 = vmax.f32 %v432_v36, %v474_v35 }
  0xc6   : > { %v524_v40 = vmax.f32 %v478_v38, %v520_v39 }
  0xc8   : > { %v570_v42 = vmax.f32 %v524_v40, %v566_v41 }
  0xca   : > { %575 = vst.msk [vmem:[%s913_s28 + $0x18] sm:$0xff] %vm571_vm5, %v570_v42 }
  0xcb PF: > { %s15_s20 = sadd.s32 1, %s804_s20   ;;  %s939_s18 = smov %s800_s19 }
  0xcc   : > { %p12_p5 = scmp.ge.s32.totalorder %s15_s20, 4   ;;  %s940_s19 = smov %s942_s21 }
  0xce   :  { %14 = sbr.rel (!%p12_p5) target bundleno = 2 (0x2), region = 76 }

</bundles_post_ra>
